<compile_context>
chip_gen: v6e
topology: v6e:2x2x1
jax: 0.10.0
libtpu: 0.0.40
codegen_flags: <defaults>
</compile_context>

<pallas_src>
import jax
import jax.numpy as jnp
from jax.experimental import pallas as pl
from jax.experimental.pallas import tpu as pltpu


def _round_up(n, m):
    return ((n + m - 1) // m) * m


def _traj_mlp_kernel(x_ref, w_ref, b_ref, o_ref):
    x = x_ref[...]
    if x.dtype != jnp.float32:          # static (trace-time) check; no per-step cast for f32 inputs
        x = x.astype(jnp.float32)

    # F.normalize(x, p=2, dim=1, eps=1e-12): x / clamp_min(||x||, 1e-12)
    #   == x * rsqrt(clamp_min(||x||^2, 1e-24))
    sq = jnp.sum(x * x, axis=-1, keepdims=True)                 # (TB, 1)
    x_n = x * jax.lax.rsqrt(jnp.maximum(sq, 1e-24))             # (TB, 128)

    # Linear: x_n @ W (W already transposed to (128, P)) + b
    y = jnp.dot(x_n, w_ref[...], preferred_element_type=jnp.float32)  # (TB, P)
    y = y + b_ref[...]                                                 # broadcast (1, P)

    # Softplus with PyTorch threshold=20: exact for y <= 20, identity for y > 20.
    sp = jnp.maximum(y, jnp.log1p(jnp.exp(jnp.minimum(y, 20.0))))

    o_ref[...] = sp.astype(o_ref.dtype)


def traj_model_mlp_forward(imputed_embeds, weight_t, bias, *, block_b=1024):
    """imputed_embeds: (B, 128); weight_t: (128, P); bias: (P,). Returns squeeze((B, P))."""
    B, D = imputed_embeds.shape
    Din, P = weight_t.shape
    assert D == Din

    # Cast parameters once in the wrapper (resident in VMEM across all batch tiles).
    weight_t = weight_t.astype(jnp.float32)
    bias2d = bias.astype(jnp.float32).reshape(1, P)

    # Batch tile: multiple of 8 (sublane), capped at block_b. Pad B up to a multiple of TB.
    TB = min(block_b, _round_up(B, 8))
    Bp = _round_up(B, TB)
    x = imputed_embeds
    if Bp != B:
        # Zero rows are harmless: ||0|| clamps to eps, 0 * rsqrt(eps^2) = 0; rows sliced off below.
        x = jnp.pad(x, ((0, Bp - B), (0, 0)))

    grid = (Bp // TB,)
    in_bytes = Bp * D * jnp.dtype(x.dtype).itemsize
    cost = pl.CostEstimate(
        flops=2 * Bp * D * P,
        transcendentals=Bp * (1 + P),                       # rsqrt per row + exp/log1p per output
        bytes_accessed=in_bytes + D * P * 4 + P * 4 + Bp * P * 4,
    )

    out = pl.pallas_call(
        _traj_mlp_kernel,
        out_shape=jax.ShapeDtypeStruct((Bp, P), jnp.float32),
        grid_spec=pltpu.PrefetchScalarGridSpec(
            num_scalar_prefetch=0,
            grid=grid,
            in_specs=[
                pl.BlockSpec((TB, D), lambda i: (i, 0)),    # streamed batch tiles
                pl.BlockSpec((D, P), lambda i: (0, 0)),     # weight: resident
                pl.BlockSpec((1, P), lambda i: (0, 0)),     # bias: resident
            ],
            out_specs=pl.BlockSpec((TB, P), lambda i: (i, 0)),
        ),
        compiler_params=pltpu.CompilerParams(
            dimension_semantics=("parallel",)),             # megacore sharding on v7x
        cost_estimate=cost,
    )(x, weight_t, bias2d)

    if Bp != B:
        out = out[:B]

    # torch.squeeze on the result
    return jnp.squeeze(out)


def init_params(key, in_features=128, out_features=8):
    """Deterministic init matching the module: xavier_uniform_ weight, default-Linear bias."""
    kw, kb = jax.random.split(key)
    limit_w = (6.0 / (in_features + out_features)) ** 0.5
    # PyTorch weight is (out, in); keep kernel-friendly transposed layout (in, out)
    weight_t = jax.random.uniform(kw, (in_features, out_features),
                                  jnp.float32, -limit_w, limit_w)
    limit_b = 1.0 / (in_features ** 0.5)
    bias = jax.random.uniform(kb, (out_features,), jnp.float32, -limit_b, limit_b)
    return weight_t, bias


if __name__ == "__main__":
    key = jax.random.PRNGKey(0)
    k_x, k_p = jax.random.split(key)

    # Module config: predict_year = 0 -> Linear(mlp_hidden_size['rnn']=128, predict_seq)
    predict_seq = 8
    rnn_hidden = 128
    batch = 16            # small test; block_b=8 forces a 2-step grid to exercise tiling

    imputed_embeds = jax.random.normal(k_x, (batch, rnn_hidden), jnp.float32)
    weight_t, bias = init_params(k_p, in_features=rnn_hidden, out_features=predict_seq)

    out = traj_model_mlp_forward(imputed_embeds, weight_t, bias, block_b=8)
    out = jax.block_until_ready(out)

    # Reference check in plain JAX (normalize -> linear -> softplus -> squeeze)
    xn = imputed_embeds / jnp.maximum(
        jnp.linalg.norm(imputed_embeds, axis=1, keepdims=True), 1e-12)
    ref = jax.nn.softplus(xn @ weight_t + bias)
    ref = jnp.squeeze(ref)
    assert out.shape == ref.shape
    assert jnp.allclose(out, ref, atol=1e-5, rtol=1e-5)

    print("KERNEL_OK")
</pallas_src>

<mosaic_0001>
module attributes {stable_mosaic.version = 11 : i64} {
  func.func @_traj_mlp_kernel(%arg0: i32, %arg1: memref<8x128xf32, #tpu.memory_space<vmem>>, %arg2: memref<128x8xf32, #tpu.memory_space<vmem>>, %arg3: memref<1x8xf32, #tpu.memory_space<vmem>>, %arg4: memref<8x8xf32, #tpu.memory_space<vmem>>) attributes {dimension_semantics = [#tpu.dimension_semantics<parallel>], iteration_bounds = array<i64: 2>, scalar_prefetch = 0 : i64, scratch_operands = 0 : i64, tpu.core_type = #tpu.core_type<tc>, window_params = [{transform_indices = @transform_0, window_bounds = array<i64: 8, 128>}, {pipeline_mode = #tpu.pipeline_mode<synchronous>, transform_indices = @transform_1, window_bounds = array<i64: 128, 8>}, {pipeline_mode = #tpu.pipeline_mode<synchronous>, transform_indices = @transform_2, window_bounds = array<i64: 1, 8>}, {transform_indices = @transform_3, window_bounds = array<i64: 8, 8>}]} {
    %c0 = arith.constant 0 : index
    %c0_0 = arith.constant 0 : index
    %0 = vector.load %arg1[%c0, %c0_0] : memref<8x128xf32, #tpu.memory_space<vmem>>, vector<8x128xf32>
    %1 = arith.mulf %0, %0 : vector<8x128xf32>
    %cst = arith.constant dense<0.000000e+00> : vector<8xf32>
    %2 = vector.multi_reduction <add>, %1, %cst [1] : vector<8x128xf32> to vector<8xf32>
    %3 = vector.shape_cast %2 : vector<8xf32> to vector<8x1xf32>
    %cst_1 = arith.constant 1.000000e-24 : f32
    %4 = vector.broadcast %cst_1 : f32 to vector<8x1xf32>
    %5 = arith.maximumf %3, %4 : vector<8x1xf32>
    %6 = math.rsqrt %5 : vector<8x1xf32>
    %7 = vector.broadcast %6 : vector<8x1xf32> to vector<8x128xf32>
    %8 = arith.mulf %0, %7 : vector<8x128xf32>
    %c0_2 = arith.constant 0 : index
    %c0_3 = arith.constant 0 : index
    %9 = vector.load %arg2[%c0_2, %c0_3] : memref<128x8xf32, #tpu.memory_space<vmem>>, vector<128x8xf32>
    %cst_4 = arith.constant dense<0.000000e+00> : vector<8x8xf32>
    %10 = tpu.matmul %8, %9, %cst_4 {dimension_numbers = #tpu.dot_dimension_numbers<[1], [0], [0], [1], [0, 0, 1, 1], [], []>} : vector<8x128xf32>, vector<128x8xf32>, vector<8x8xf32> -> vector<8x8xf32>
    %c0_5 = arith.constant 0 : index
    %c0_6 = arith.constant 0 : index
    %11 = vector.load %arg3[%c0_5, %c0_6] : memref<1x8xf32, #tpu.memory_space<vmem>>, vector<1x8xf32>
    %12 = vector.broadcast %11 : vector<1x8xf32> to vector<8x8xf32>
    %13 = arith.addf %10, %12 : vector<8x8xf32>
    %cst_7 = arith.constant 2.000000e+01 : f32
    %14 = vector.broadcast %cst_7 : f32 to vector<8x8xf32>
    %15 = arith.minimumf %13, %14 : vector<8x8xf32>
    %16 = math.exp %15 : vector<8x8xf32>
    %17 = math.log1p %16 : vector<8x8xf32>
    %18 = arith.maximumf %13, %17 : vector<8x8xf32>
    %c0_8 = arith.constant 0 : index
    %c0_9 = arith.constant 0 : index
    %19 = vector.load %arg4[%c0_8, %c0_9] : memref<8x8xf32, #tpu.memory_space<vmem>>, vector<8x8xf32>
    tpu.vector_store %arg4[%c0_8, %c0_9], %18 {strides = array<i32>} : memref<8x8xf32, #tpu.memory_space<vmem>>, vector<8x8xf32>,
    return
  }
  func.func @transform_0(%arg0: i32) -> (i32, i32) {
    %c0_i32 = arith.constant 0 : i32
    %c0_i32_0 = arith.constant 0 : i32
    return %arg0, %c0_i32 : i32, i32
  }
  func.func @transform_1(%arg0: i32) -> (i32, i32) {
    %c0_i32 = arith.constant 0 : i32
    %c0_i32_0 = arith.constant 0 : i32
    %c0_i32_1 = arith.constant 0 : i32
    return %c0_i32, %c0_i32_0 : i32, i32
  }
  func.func @transform_2(%arg0: i32) -> (i32, i32) {
    %c0_i32 = arith.constant 0 : i32
    %c0_i32_0 = arith.constant 0 : i32
    %c0_i32_1 = arith.constant 0 : i32
    return %c0_i32, %c0_i32_0 : i32, i32
  }
  func.func @transform_3(%arg0: i32) -> (i32, i32) {
    %c0_i32 = arith.constant 0 : i32
    %c0_i32_0 = arith.constant 0 : i32
    return %arg0, %c0_i32 : i32, i32
  }
}

</mosaic_0001>

<bundles_post_ra>
// kernel: tpu_custom_call.1
= control target key start
LH: loop header
LB: loop body
LE: loop exit
PB: predicated region body
PF: predicated region fallthrough
CT: control target
= control target key end

     0   :  { %s442_s12 = smov 0   ;;  %s517_s0 = inlined_call_operand.vmem [shape: f32[16,128], index: 0, kind: input, shape index: {}]   ;;  %s518_s1 = inlined_call_operand.vmem [shape: f32[128,8], index: 1, kind: input, shape index: {}]   ;;  %s519_s2 = inlined_call_operand.vmem [shape: f32[1,8], index: 2, kind: input, shape index: {}]   ;;  %s520_s3 = inlined_call_operand.vmem [shape: f32[16,8], index: 3, kind: output, shape index: {}]  }
   0x1 LB: > { %s334_s13 = sadd.s32 4294967295, %s418_s12   ;;  %p338_p0 = scmp.ge.s32.totalorder %s418_s12, 1  ;;  %s418_s12 = sphi %s442_s12, %s13_s12  }
   0x2   : > { %p136_p1 = scmp.lt.s32.totalorder %s418_s12, 3 }
   0x4   : > { %p137_p2 = pnand %p338_p0, %p136_p1 }
   0x5   : > { %p158_p3 = scmp.lt.s32.totalorder (!%p137_p2), %s334_s13, 1 }
   0x6   : > { %140 = sbr.rel (%p137_p2) target bundleno = 408 (0x198), region = 32 }
   0xb   : > { %v188_v0 = vld [vmem:[%s518_s1 + $0x78] sm:$0xff]  ;;  %v420_v1 = vmov 0.0   ;;  %v187_v2 = vld [vmem:[%s518_s1 + $0x70] sm:$0xff]  ;;  %s522_s13 = smov (!%p158_p3, %s334_s13), 1  ;;  %v186_v3 = vld [vmem:[%s518_s1 + $0x68] sm:$0xff]  ;;  %vm421_vm0 = vmmov 0  }
   0xc   : > { %361 = vmatprep.subr.mxu0 %v420_v1  ;;  %s339_s20 = sshll.u32 %s522_s13, 3  ;;  %v185_v4 = vld [vmem:[%s518_s1 + $0x60] sm:$0xff]  ;;  %v184_v7 = vld [vmem:[%s518_s1 + $0x58] sm:$0xff]  ;;  %v183_v8 = vld [vmem:[%s518_s1 + $0x50] sm:$0xff]  ;;  %393 = vmatprep.mubr.msk.f32.mxu0 %vm421_vm0, %v420_v1  ;;  %vm279_vm2 = vcmask 64512  }
   0xd   : > { %362 = vmatpush3.msra.mxu0 %v188_v0  ;;  %s161_s23 = scalar_lea.vmem %s517_s0, %s339_s20  ;;  %v182_v9 = vld [vmem:[%s518_s1 + $0x48] sm:$0xff]  ;;  %v181_v10 = vld [vmem:[%s518_s1 + $0x40] sm:$0xff]  ;;  %v180_v11 = vld [vmem:[%s518_s1 + $0x38] sm:$0xff]  ;;  %s165_s30 = scalar_lea.vmem %s520_s3, %s339_s20 }
   0xe   : > { %363 = vmatprep.subr.mxu0 %v420_v1  ;;  %v166_v5 = vld [vmem:[%s161_s23] sm:$0xff]  ;;  %v179_v12 = vld [vmem:[%s518_s1 + $0x30] sm:$0xff]  ;;  %v178_v13 = vld [vmem:[%s518_s1 + $0x28] sm:$0xff] }
   0xf   : > { %364 = vmatpush3.msra.mxu0 %v187_v2  ;;  %v167_v6 = vmul.f32 %v166_v5, %v166_v5  ;;  %v177_v14 = vld [vmem:[%s518_s1 + $0x20] sm:$0xff]  ;;  %v176_v15 = vld [vmem:[%s518_s1 + $0x18] sm:$0xff]  ;;  %v175_v16 = vld [vmem:[%s518_s1 + $0x10] sm:$0xff] }
  0x10   : > { %365 = vmatprep.subr.mxu0 %v420_v1  ;;  %v174_v17 = vld [vmem:[%s518_s1 + $0x8] sm:$0xff]  ;;  %v173_v18 = vld [vmem:[%s518_s1] sm:$0xff] }
  0x11   : > { %366 = vmatpush3.msra.mxu0 %v186_v3  ;;  %168 = vadd.xlane.f32.xlu0 %v167_v6  ;;  %v341_v23 = vld [vmem:[%s519_s2] ss:$0 sm:$0xff] }
  0x12   : > { %367 = vmatprep.subr.mxu0 %v420_v1 }
  0x13   : > { %368 = vmatpush3.msra.mxu0 %v185_v4 }
  0x14   : > { %369 = vmatprep.subr.mxu0 %v420_v1 }
  0x15   : > { %370 = vmatpush3.msra.mxu0 %v184_v7 }
  0x16   : > { %371 = vmatprep.subr.mxu0 %v420_v1 }
  0x17   : > { %372 = vmatpush3.msra.mxu0 %v183_v8 }
  0x18   : > { %373 = vmatprep.subr.mxu0 %v420_v1 }
  0x19   : > { %374 = vmatpush3.msra.mxu0 %v182_v9 }
  0x1a   : > { %375 = vmatprep.subr.mxu0 %v420_v1 }
  0x1b   : > { %376 = vmatpush3.msra.mxu0 %v181_v10 }
  0x1c   : > { %377 = vmatprep.subr.mxu0 %v420_v1 }
  0x1d   : > { %378 = vmatpush3.msra.mxu0 %v180_v11 }
  0x1e   : > { %379 = vmatprep.subr.mxu0 %v420_v1 }
  0x1f   : > { %380 = vmatpush3.msra.mxu0 %v179_v12 }
  0x20   : > { %381 = vmatprep.subr.mxu0 %v420_v1 }
  0x21   : > { %382 = vmatpush3.msra.mxu0 %v178_v13 }
  0x22   : > { %383 = vmatprep.subr.mxu0 %v420_v1 }
  0x23   : > { %384 = vmatpush3.msra.mxu0 %v177_v14 }
  0x24   : > { %385 = vmatprep.subr.mxu0 %v420_v1 }
  0x25   : > { %386 = vmatpush3.msra.mxu0 %v176_v15 }
  0x26   : > { %387 = vmatprep.subr.mxu0 %v420_v1 }
  0x27   : > { %388 = vmatpush3.msra.mxu0 %v175_v16 }
  0x28   : > { %389 = vmatprep.subr.mxu0 %v420_v1 }
  0x29   : > { %390 = vmatpush3.msra.mxu0 %v174_v17 }
  0x2a   : > { %391 = vmatprep.subr.mxu0 %v420_v1 }
  0x2b   : > { %392 = vmatpush3.msra.mxu0 %v173_v18 }
  0x9a   : > { %v169_v19 = vpop.xlane.xlu0 %168 }
  0x9b   : > { %v170_v20 = vmax.f32 %v169_v19, 1e-24 }
  0x9d   : > { %406 = vrsqrt.f32 %v170_v20 }
  0xaa   : > { %v407_v21 = vpop.eup %406 }
  0xab   : > { %v172_v22 = vmul.f32 %v407_v21, %v166_v5 }
  0xad   : > { %394 = vmatmul.mubr.f32.vlgmr.msra.gmra.mxu0 %v172_v22 }
 0x16d   : > { %v262_v24 = vpop.f32.mrf.mxu0 }
 0x16e   : > { %v263_v25 = vadd.f32 %v341_v23, %v262_v24 }
 0x16f   : > { %v395_v26 = vpop.f32.mrf.mxu0 }
 0x170   : > { %v266_v27 = vmin.f32 %v263_v25, 20.0 }
 0x172   : > { %v267_v28 = vmul.f32 1.442695, %v266_v27 }
 0x174   : > { %408 = vpow2.f32 %v267_v28 }
 0x181   : > { %v409_v29 = vpop.eup %408 }
 0x182   : > { %v269_v30 = vadd.f32 1.0, %v409_v29  ;;  %v272_v31 = vmul.f32 -0.5, %v409_v29  ;;  %v275_v33 = vand.u32 2147483647, %v409_v29 }
 0x184   : > { %410 = vlog2.f32 %v269_v30  ;;  %v273_v32 = vadd.f32 1.0, %v272_v31  ;;  %vm276_vm1 = vcmp.lt.f32.partialorder %v275_v33, 0.0004427343 }
 0x186   : > { %v274_v36 = vmul.f32 %v409_v29, %v273_v32 }
 0x191   : > { %v411_v34 = vpop.eup %410 }
 0x192   : > { %v271_v35 = vmul.f32 0.6931472, %v411_v34 }
 0x194   : > { %v277_v37 = vsel %vm276_vm1, %v274_v36, %v271_v35 }
 0x195   : > { %v278_v38 = vmax.f32 %v263_v25, %v277_v37 }
 0x197   : > { %280 = vst.msk [vmem:[%s165_s30] sm:$0xff] %vm279_vm2, %v278_v38 }
 0x198 PF: > { %s13_s12 = sadd.s32 1, %s418_s12  }
 0x199   : > { %p10_p4 = scmp.ge.s32.totalorder %s13_s12, 4  }
 0x19b   :  { %12 = sbr.rel (!%p10_p4) target bundleno = 1 (0x1), region = 62 }

</bundles_post_ra>
